<compile_context>
chip_gen: v5e
topology: v5e:2x2
jax: 0.10.0
libtpu: 0.0.40
codegen_flags: <defaults>
</compile_context>

<pallas_src>
import jax
import jax.numpy as jnp
from jax.experimental import pallas as pl
from jax.experimental.pallas import tpu as pltpu  # noqa: F401  (not needed for this tiny fused kernel)

# ----------------------------- configuration ---------------------------------
B, C_IN, H, W = 2, 4, 16, 16
C_MID = 32            # conv output channels
KSIZE = 3             # conv kernel (padding=1, stride=1 -> same spatial size)
NUM_CLASSES = 10
HW = H * W            # 256
KD = C_IN * KSIZE * KSIZE   # 36  (conv GEMM contraction depth)
M = B * HW            # 512  (lane dimension inside the kernel)


# --------------------------- fused Pallas kernel ------------------------------
def fused_conv_pool_head_kernel(p_ref, w_ref, b_ref, wh_ref, bh_ref, o_ref):
    """Single-launch forward pass.

    p_ref : [KD, M]              transposed im2col patches (rows = (c,ky,kx), cols = (b,h,w))
    w_ref : [C_MID, KD]          conv weight, OIHW flattened
    b_ref : [C_MID, 1]           conv bias
    wh_ref: [NUM_CLASSES, C_MID] head weight (PyTorch [out, in])
    bh_ref: [NUM_CLASSES, 1]     head bias
    o_ref : [NUM_CLASSES, B]     transposed logits (host transposes back, 80 bytes)
    """
    # 3x3 conv as one lane-dense GEMM: [C_MID, KD] @ [KD, M] -> [C_MID, M]
    act = jnp.dot(w_ref[...], p_ref[...], preferred_element_type=jnp.float32)
    act = jnp.maximum(act + b_ref[...], 0.0)              # bias + ReLU, stays in VMEM/vregs

    # Global average pool per batch element: lane-axis reduce over each HW block
    # (HW = 256 is a multiple of 128, so the slices are lane-tile aligned).
    inv_hw = 1.0 / HW
    cols = []
    for bi in range(B):                                   # B is a tiny static constant
        cols.append(jnp.sum(act[:, bi * HW:(bi + 1) * HW], axis=1, keepdims=True))
    latent = jnp.concatenate(cols, axis=1) * inv_hw       # [C_MID, B]

    # Linear head: [NUM_CLASSES, C_MID] @ [C_MID, B] + bias
    logits = jnp.dot(wh_ref[...], latent, preferred_element_type=jnp.float32)
    o_ref[...] = (logits + bh_ref[...]).astype(o_ref.dtype)


def fused_forward(patches_t, w_flat, conv_b, head_w, head_b):
    kd, m = patches_t.shape
    return pl.pallas_call(
        fused_conv_pool_head_kernel,
        out_shape=jax.ShapeDtypeStruct((NUM_CLASSES, B), jnp.float32),
        grid=(1,),
        in_specs=[
            pl.BlockSpec((kd, m), lambda i: (0, 0)),
            pl.BlockSpec((C_MID, kd), lambda i: (0, 0)),
            pl.BlockSpec((C_MID, 1), lambda i: (0, 0)),
            pl.BlockSpec((NUM_CLASSES, C_MID), lambda i: (0, 0)),
            pl.BlockSpec((NUM_CLASSES, 1), lambda i: (0, 0)),
        ],
        out_specs=pl.BlockSpec((NUM_CLASSES, B), lambda i: (0, 0)),
    )(patches_t, w_flat, conv_b, head_w, head_b)


# ------------------------------ host-side glue --------------------------------
def _extract_patches_t(x):
    """x: [B, C, H, W] -> transposed patches [C*K*K, B*H*W].

    Row order is (c, ky, kx) to match conv_w.reshape(C_MID, C*K*K);
    column order is (b, h, w). Cheap pad/slice/stack, fused by XLA under jit.
    """
    b, c, h, w = x.shape
    xp = jnp.pad(x, ((0, 0), (0, 0), (1, 1), (1, 1)))
    taps = [xp[:, :, ky:ky + h, kx:kx + w]                 # each [B, C, H, W]
            for ky in range(KSIZE) for kx in range(KSIZE)]
    p = jnp.stack(taps, axis=2)                            # [B, C, K*K, H, W]
    p = jnp.transpose(p, (1, 2, 0, 3, 4))                  # [C, K*K, B, H, W]
    return p.reshape(c * KSIZE * KSIZE, b * h * w)         # [KD, M]


@jax.jit
def model_forward(img, params):
    """Equivalent of Model.forward: latent = model(img); return head(latent, b)."""
    b, c, h, w = img.shape
    patches_t = _extract_patches_t(img)                               # [36, 512]
    w_flat = params["conv_w"].reshape(C_MID, c * KSIZE * KSIZE)       # [32, 36]
    logits_t = fused_forward(
        patches_t,
        w_flat,
        params["conv_b"].reshape(C_MID, 1),
        params["head_w"],                                             # [10, 32]
        params["head_b"].reshape(NUM_CLASSES, 1),
    )
    return logits_t.T                                                 # [B, NUM_CLASSES]


def init_params(key):
    k1, k2, k3, k4 = jax.random.split(key, 4)
    conv_w = jax.random.normal(k1, (C_MID, C_IN, KSIZE, KSIZE), jnp.float32) * 0.1
    conv_b = jax.random.normal(k2, (C_MID,), jnp.float32) * 0.01
    head_w = jax.random.normal(k3, (NUM_CLASSES, C_MID), jnp.float32) * 0.1   # PyTorch [out, in]
    head_b = jax.random.normal(k4, (NUM_CLASSES,), jnp.float32) * 0.01
    return {"conv_w": conv_w, "conv_b": conv_b, "head_w": head_w, "head_b": head_b}


if __name__ == "__main__":
    key = jax.random.PRNGKey(0)
    pkey, xkey = jax.random.split(key)
    params = init_params(pkey)
    img = jax.random.normal(xkey, (B, C_IN, H, W), jnp.float32)

    out = model_forward(img, params)
    out = jax.block_until_ready(out)

    # pure-JAX reference for the same forward pass
    ref_conv = jax.lax.conv_general_dilated(
        img, params["conv_w"], window_strides=(1, 1), padding="SAME",
        dimension_numbers=("NCHW", "OIHW", "NCHW"))
    ref_act = jnp.maximum(ref_conv + params["conv_b"][None, :, None, None], 0.0)
    ref_latent = jnp.mean(ref_act, axis=(2, 3))                       # [B, C_MID]
    ref_out = ref_latent @ params["head_w"].T + params["head_b"]

    assert out.shape == (B, NUM_CLASSES)
    assert jnp.allclose(out, ref_out, atol=1e-4, rtol=1e-4)

    print("KERNEL_OK")
</pallas_src>

<mosaic_0001>
module attributes {stable_mosaic.version = 11 : i64} {
  func.func @fused_conv_pool_head_kernel(%arg0: i32, %arg1: memref<36x512xf32, #tpu.memory_space<vmem>>, %arg2: memref<32x36xf32, #tpu.memory_space<vmem>>, %arg3: memref<32x1xf32, #tpu.memory_space<vmem>>, %arg4: memref<10x32xf32, #tpu.memory_space<vmem>>, %arg5: memref<10x1xf32, #tpu.memory_space<vmem>>, %arg6: memref<10x2xf32, #tpu.memory_space<vmem>>) attributes {dimension_semantics = [#tpu.dimension_semantics<arbitrary>], iteration_bounds = array<i64: 1>, scalar_prefetch = 0 : i64, scratch_operands = 0 : i64, tpu.core_type = #tpu.core_type<tc>, window_params = [{pipeline_mode = #tpu.pipeline_mode<synchronous>, transform_indices = @transform_0, window_bounds = array<i64: 36, 512>}, {pipeline_mode = #tpu.pipeline_mode<synchronous>, transform_indices = @transform_1, window_bounds = array<i64: 32, 36>}, {pipeline_mode = #tpu.pipeline_mode<synchronous>, transform_indices = @transform_2, window_bounds = array<i64: 32, 1>}, {pipeline_mode = #tpu.pipeline_mode<synchronous>, transform_indices = @transform_3, window_bounds = array<i64: 10, 32>}, {pipeline_mode = #tpu.pipeline_mode<synchronous>, transform_indices = @transform_4, window_bounds = array<i64: 10, 1>}, {pipeline_mode = #tpu.pipeline_mode<synchronous>, transform_indices = @transform_5, window_bounds = array<i64: 10, 2>}]} {
    %c0 = arith.constant 0 : index
    %c0_0 = arith.constant 0 : index
    %0 = vector.load %arg2[%c0, %c0_0] : memref<32x36xf32, #tpu.memory_space<vmem>>, vector<32x36xf32>
    %c0_1 = arith.constant 0 : index
    %c0_2 = arith.constant 0 : index
    %1 = vector.load %arg1[%c0_1, %c0_2] : memref<36x512xf32, #tpu.memory_space<vmem>>, vector<36x512xf32>
    %cst = arith.constant dense<0.000000e+00> : vector<32x512xf32>
    %2 = tpu.matmul %0, %1, %cst {dimension_numbers = #tpu.dot_dimension_numbers<[1], [0], [0], [1], [0, 0, 1, 1], [], []>} : vector<32x36xf32>, vector<36x512xf32>, vector<32x512xf32> -> vector<32x512xf32>
    %c0_3 = arith.constant 0 : index
    %c0_4 = arith.constant 0 : index
    %3 = vector.load %arg3[%c0_3, %c0_4] : memref<32x1xf32, #tpu.memory_space<vmem>>, vector<32x1xf32>
    %4 = vector.broadcast %3 : vector<32x1xf32> to vector<32x512xf32>
    %5 = arith.addf %2, %4 : vector<32x512xf32>
    %cst_5 = arith.constant 0.000000e+00 : f32
    %6 = vector.broadcast %cst_5 : f32 to vector<32x512xf32>
    %7 = arith.maximumf %5, %6 : vector<32x512xf32>
    %8 = vector.extract_strided_slice %7 {offsets = [0, 0], sizes = [32, 256], strides = [1, 1]} : vector<32x512xf32> to vector<32x256xf32>
    %cst_6 = arith.constant dense<0.000000e+00> : vector<32xf32>
    %9 = vector.multi_reduction <add>, %8, %cst_6 [1] : vector<32x256xf32> to vector<32xf32>
    %10 = vector.shape_cast %9 : vector<32xf32> to vector<32x1xf32>
    %11 = vector.extract_strided_slice %7 {offsets = [0, 256], sizes = [32, 256], strides = [1, 1]} : vector<32x512xf32> to vector<32x256xf32>
    %cst_7 = arith.constant dense<0.000000e+00> : vector<32xf32>
    %12 = vector.multi_reduction <add>, %11, %cst_7 [1] : vector<32x256xf32> to vector<32xf32>
    %13 = vector.shape_cast %12 : vector<32xf32> to vector<32x1xf32>
    %14 = tpu.concatenate %10, %13 in 1 : vector<32x1xf32>, vector<32x1xf32> -> vector<32x2xf32>
    %cst_8 = arith.constant 3.906250e-03 : f32
    %15 = vector.broadcast %cst_8 : f32 to vector<32x2xf32>
    %16 = arith.mulf %14, %15 : vector<32x2xf32>
    %c0_9 = arith.constant 0 : index
    %c0_10 = arith.constant 0 : index
    %17 = vector.load %arg4[%c0_9, %c0_10] : memref<10x32xf32, #tpu.memory_space<vmem>>, vector<10x32xf32>
    %cst_11 = arith.constant dense<0.000000e+00> : vector<10x2xf32>
    %18 = tpu.matmul %17, %16, %cst_11 {dimension_numbers = #tpu.dot_dimension_numbers<[1], [0], [0], [1], [0, 0, 1, 1], [], []>} : vector<10x32xf32>, vector<32x2xf32>, vector<10x2xf32> -> vector<10x2xf32>
    %c0_12 = arith.constant 0 : index
    %c0_13 = arith.constant 0 : index
    %19 = vector.load %arg5[%c0_12, %c0_13] : memref<10x1xf32, #tpu.memory_space<vmem>>, vector<10x1xf32>
    %20 = vector.broadcast %19 : vector<10x1xf32> to vector<10x2xf32>
    %21 = arith.addf %18, %20 : vector<10x2xf32>
    %c0_14 = arith.constant 0 : index
    %c0_15 = arith.constant 0 : index
    %22 = vector.load %arg6[%c0_14, %c0_15] : memref<10x2xf32, #tpu.memory_space<vmem>>, vector<10x2xf32>
    tpu.vector_store %arg6[%c0_14, %c0_15], %21 {strides = array<i32>} : memref<10x2xf32, #tpu.memory_space<vmem>>, vector<10x2xf32>,
    return
  }
  func.func @transform_0(%arg0: i32) -> (i32, i32) {
    %c0_i32 = arith.constant 0 : i32
    %c0_i32_0 = arith.constant 0 : i32
    %c0_i32_1 = arith.constant 0 : i32
    return %c0_i32, %c0_i32_0 : i32, i32
  }
  func.func @transform_1(%arg0: i32) -> (i32, i32) {
    %c0_i32 = arith.constant 0 : i32
    %c0_i32_0 = arith.constant 0 : i32
    %c0_i32_1 = arith.constant 0 : i32
    return %c0_i32, %c0_i32_0 : i32, i32
  }
  func.func @transform_2(%arg0: i32) -> (i32, i32) {
    %c0_i32 = arith.constant 0 : i32
    %c0_i32_0 = arith.constant 0 : i32
    %c0_i32_1 = arith.constant 0 : i32
    return %c0_i32, %c0_i32_0 : i32, i32
  }
  func.func @transform_3(%arg0: i32) -> (i32, i32) {
    %c0_i32 = arith.constant 0 : i32
    %c0_i32_0 = arith.constant 0 : i32
    %c0_i32_1 = arith.constant 0 : i32
    return %c0_i32, %c0_i32_0 : i32, i32
  }
  func.func @transform_4(%arg0: i32) -> (i32, i32) {
    %c0_i32 = arith.constant 0 : i32
    %c0_i32_0 = arith.constant 0 : i32
    %c0_i32_1 = arith.constant 0 : i32
    return %c0_i32, %c0_i32_0 : i32, i32
  }
  func.func @transform_5(%arg0: i32) -> (i32, i32) {
    %c0_i32 = arith.constant 0 : i32
    %c0_i32_0 = arith.constant 0 : i32
    %c0_i32_1 = arith.constant 0 : i32
    return %c0_i32, %c0_i32_0 : i32, i32
  }
}

</mosaic_0001>

<bundles_post_ra>
// kernel: model_forward.1
= control target key start
LH: loop header
LB: loop body
LE: loop exit
PB: predicated region body
PF: predicated region fallthrough
CT: control target
= control target key end

     0   :  { %vm81_vm0 = vcmask 1043456   ;;  %v341_v3 = vmov 0   ;;  %vm68_vm1 = vcmask 293888   ;;  %vm250_vm2 = vcmask 7168   ;;  %s490_s0 = inlined_call_operand.vmem [shape: f32[36,512], index: 0, kind: input, shape index: {}]   ;;  %s491_s1 = inlined_call_operand.vmem [shape: f32[32,36], index: 1, kind: input, shape index: {}]   ;;  %s492_s2 = inlined_call_operand.vmem [shape: f32[32,1], index: 2, kind: input, shape index: {}]   ;;  %s493_s4 = inlined_call_operand.vmem [shape: f32[10,1], index: 4, kind: input, shape index: {}]   ;;  %s494_s3 = inlined_call_operand.vmem [shape: f32[10,32], index: 3, kind: input, shape index: {}]   ;;  %s495_s5 = inlined_call_operand.vmem [shape: f32[10,2], index: 5, kind: output, shape index: {}]  }
   0x1   :  { %v40_v0 = vld [vmem:[%s490_s0 + $0x80] sm:$0xf]  ;;  %v41_v1 = vld [vmem:[%s490_s0 + $0x88] sm:$0xf]  ;;  %v42_v2 = vld [vmem:[%s490_s0 + $0x90] sm:$0xf]  ;;  %339 = vset.pattern.permute.xlu1 %v341_v3  ;;  %338 = vset.pattern.permute.xlu0 %v341_v3 }
   0x2   :  { %311 = vmatpush.msk.msra.mxu0 %vm81_vm0, %v40_v0  ;;  %316 = vmatpush.msk.msra.mxu1 %vm81_vm0, %v41_v1  ;;  %v43_v4 = vld [vmem:[%s490_s0 + $0x98] sm:$0xf]  ;;  %v36_v5 = vld [vmem:[%s490_s0 + $0x60] sm:$0xff]  ;;  %v37_v6 = vld [vmem:[%s490_s0 + $0x68] sm:$0xff]  ;;  %vm273_vm3 = vcmask 261120   ;;  %vm305_vm4 = vcmask 9216  }
   0x3   :  { %321 = vmatpush.msk.msra.mxu2 %vm81_vm0, %v42_v2  ;;  %326 = vmatpush.msk.msra.mxu3 %vm81_vm0, %v43_v4  ;;  %v38_v7 = vld [vmem:[%s490_s0 + $0x70] sm:$0xff]  ;;  %v39_v8 = vld [vmem:[%s490_s0 + $0x78] sm:$0xff]  ;;  %v32_v9 = vld [vmem:[%s490_s0 + $0x40] sm:$0xff]  ;;  %vm303_vm5 = vcmask 15360  }
   0x4   :  { %106 = vmatpush.msra.mxu0 %v36_v5  ;;  %135 = vmatpush.msra.mxu1 %v37_v6  ;;  %v33_v10 = vld [vmem:[%s490_s0 + $0x48] sm:$0xff]  ;;  %v34_v11 = vld [vmem:[%s490_s0 + $0x50] sm:$0xff]  ;;  %v35_v12 = vld [vmem:[%s490_s0 + $0x58] sm:$0xff] }
   0x5   :  { %164 = vmatpush.msra.mxu2 %v38_v7  ;;  %193 = vmatpush.msra.mxu3 %v39_v8  ;;  %v28_v13 = vld [vmem:[%s490_s0 + $0x20] sm:$0xff]  ;;  %v29_v14 = vld [vmem:[%s490_s0 + $0x28] sm:$0xff]  ;;  %v30_v15 = vld [vmem:[%s490_s0 + $0x30] sm:$0xff] }
   0x6   :  { %107 = vmatpush.msra.mxu0 %v32_v9  ;;  %136 = vmatpush.msra.mxu1 %v33_v10  ;;  %v31_v16 = vld [vmem:[%s490_s0 + $0x38] sm:$0xff]  ;;  %v24_v17 = vld [vmem:[%s490_s0] sm:$0xff]  ;;  %v25_v18 = vld [vmem:[%s490_s0 + $0x8] sm:$0xff] }
   0x7   :  { %165 = vmatpush.msra.mxu2 %v34_v11  ;;  %194 = vmatpush.msra.mxu3 %v35_v12  ;;  %v26_v19 = vld [vmem:[%s490_s0 + $0x10] sm:$0xff]  ;;  %v27_v20 = vld [vmem:[%s490_s0 + $0x18] sm:$0xff]  ;;  %v20_v21 = vld [vmem:[%s491_s1] sm:$0xff] }
   0x8   :  { %108 = vmatpush.msra.mxu0 %v28_v13  ;;  %137 = vmatpush.msra.mxu1 %v29_v14  ;;  %v45_v22 = vld [vmem:[%s492_s2 + $0x8] sm:$0xff]  ;;  %v47_v23 = vld [vmem:[%s492_s2 + $0x18] sm:$0xff]  ;;  %v44_v25 = vld [vmem:[%s492_s2] sm:$0xff] }
   0x9   :  { %166 = vmatpush.msra.mxu2 %v30_v15  ;;  %195 = vmatpush.msra.mxu3 %v31_v16  ;;  %v21_v24 = vld [vmem:[%s491_s1 + $0x8] sm:$0xff]  ;;  %v46_v26 = vld [vmem:[%s492_s2 + $0x10] sm:$0xff]  ;;  %v23_v28 = vld [vmem:[%s491_s1 + $0x18] sm:$0xff] }
   0xa   :  { %109 = vmatpush.msra.mxu0 %v24_v17  ;;  %138 = vmatpush.msra.mxu1 %v25_v18  ;;  %v22_v27 = vld [vmem:[%s491_s1 + $0x10] sm:$0xff]  ;;  %v262_v17 = vld [vmem:[%s493_s4 + $0x8] sm:$0x3] }
   0xb   :  { %167 = vmatpush.msra.mxu2 %v26_v19  ;;  %196 = vmatpush.msra.mxu3 %v27_v20 }
   0xc   :  { %312 = vmatmul.msk.f32.vlgmr.msra.gmra.mxu0 %vm68_vm1, %v20_v21  ;;  %317 = vmatmul.msk.f32.vlgmr.msra.gmra.mxu1 %vm68_vm1, %v20_v21 }
   0xd   :  { %322 = vmatmul.msk.f32.vlgmr.msra.gmra.mxu2 %vm68_vm1, %v20_v21  ;;  %327 = vmatmul.msk.f32.vlgmr.msra.gmra.mxu3 %vm68_vm1, %v20_v21 }
   0xe   :  { %55 = vperm.xlu1 %339, %v45_v22   ;;  %65 = vperm.xlu0 %338, %v47_v23  }
   0xf   :  { %340 = vset.pattern.permute.xlu2 %v341_v3 }
  0x14   :  { %313 = vmatmul.msk.f32.gmra.mxu0 %vm68_vm1, %v21_v24  ;;  %318 = vmatmul.msk.f32.gmra.mxu1 %vm68_vm1, %v21_v24 }
  0x15   :  { %323 = vmatmul.msk.f32.gmra.mxu2 %vm68_vm1, %v21_v24  ;;  %328 = vmatmul.msk.f32.gmra.mxu3 %vm68_vm1, %v21_v24 }
  0x16   :  { %50 = vperm.xlu1 %339, %v44_v25   ;;  %60 = vperm.xlu0 %338, %v46_v26  }
  0x1c   :  { %314 = vmatmul.msk.f32.gmra.mxu0 %vm68_vm1, %v22_v27  ;;  %319 = vmatmul.msk.f32.gmra.mxu1 %vm68_vm1, %v22_v27 }
  0x1d   :  { %324 = vmatmul.msk.f32.gmra.mxu2 %vm68_vm1, %v22_v27  ;;  %329 = vmatmul.msk.f32.gmra.mxu3 %vm68_vm1, %v22_v27 }
  0x24   :  { %315 = vmatmul.msk.f32.gmra.mxu0 %vm68_vm1, %v23_v28  ;;  %320 = vmatmul.msk.f32.gmra.mxu1 %vm68_vm1, %v23_v28 }
  0x25   :  { %325 = vmatmul.msk.f32.gmra.mxu2 %vm68_vm1, %v23_v28  ;;  %330 = vmatmul.msk.f32.gmra.mxu3 %vm68_vm1, %v23_v28  ;;  %v261_v28 = vld [vmem:[%s493_s4] sm:$0xff] }
  0x80   :  { %v66_v31 = vpop.permute.xlu0 %65  ;;  %v56_v32 = vpop.permute.xlu1 %55 }
  0x88   :  { %v61_v42 = vpop.permute.xlu0 %60  ;;  %v51_v51 = vpop.permute.xlu1 %50 }
  0x89   :  { %v111_v29 = vpop.f32.mrf.mxu0  ;;  %v140_v30 = vpop.f32.mrf.mxu1 }
  0x8a   :  { %v112_v56 = vadd.f32 %v111_v29, %v51_v51  ;;  %v141_v57 = vadd.f32 %v140_v30, %v51_v51 }
  0x8c   :  { %v210_v2 = vmax.f32 %v112_v56, 0.0  ;;  %v211_v3 = vmax.f32 %v141_v57, 0.0 }
  0x8e   :  { %v226_v9 = vadd.f32 %v211_v3, %v210_v2 }
  0x90   :  { %v169_v33 = vpop.f32.mrf.mxu2  ;;  %v198_v34 = vpop.f32.mrf.mxu3 }
  0x91   :  { %v114_v35 = vpop.f32.mrf.mxu0  ;;  %v143_v36 = vpop.f32.mrf.mxu1  ;;  %v170_v20 = vadd.f32 %v169_v33, %v51_v51  ;;  %v199_v21 = vadd.f32 %v198_v34, %v51_v51 }
  0x92   :  { %v115_v37 = vadd.f32 %v114_v35, %v56_v32  ;;  %v144_v38 = vadd.f32 %v143_v36, %v56_v32 }
  0x93   :  { %v212_v23 = vmax.f32 %v170_v20, 0.0  ;;  %v213_v24 = vmax.f32 %v199_v21, 0.0 }
  0x94   :  { %v214_v39 = vmax.f32 %v115_v37, 0.0  ;;  %v215_v40 = vmax.f32 %v144_v38, 0.0 }
  0x95   :  { %v238_v25 = vadd.f32 %v213_v24, %v212_v23 }
  0x96   :  { %v229_v41 = vadd.f32 %v215_v40, %v214_v39 }
  0x98   :  { %v172_v43 = vpop.f32.mrf.mxu2  ;;  %v201_v44 = vpop.f32.mrf.mxu3  ;;  %230 = vadd.xlane.f32.xlu2 %v229_v41 }
  0x99   :  { %v173_v45 = vadd.f32 %v172_v43, %v56_v32  ;;  %v202_v46 = vadd.f32 %v201_v44, %v56_v32  ;;  %v117_v47 = vpop.f32.mrf.mxu0  ;;  %v146_v48 = vpop.f32.mrf.mxu1  ;;  %v260_v43 = vld [vmem:[%s494_s3 + $0x8] sm:$0x3]  ;;  %v259_v44 = vld [vmem:[%s494_s3] sm:$0xff] }
  0x9a   :  { %v118_v49 = vadd.f32 %v117_v47, %v61_v42  ;;  %v147_v50 = vadd.f32 %v146_v48, %v61_v42 }
  0x9b   :  { %v216_v52 = vmax.f32 %v173_v45, 0.0  ;;  %v217_v53 = vmax.f32 %v202_v46, 0.0 }
  0x9c   :  { %v218_v54 = vmax.f32 %v118_v49, 0.0  ;;  %v219_v55 = vmax.f32 %v147_v50, 0.0 }
  0x9d   :  { %v241_v59 = vadd.f32 %v217_v53, %v216_v52 }
  0x9e   :  { %v232_v58 = vadd.f32 %v219_v55, %v218_v54 }
  0xa0   :  { %233 = vadd.xlane.f32.xlu0 %v232_v58  ;;  %242 = vadd.xlane.f32.xlu2 %v241_v59  ;;  %v175_v60 = vpop.f32.mrf.mxu2  ;;  %v204_v61 = vpop.f32.mrf.mxu3 }
  0xa1   :  { %v176_v62 = vadd.f32 %v175_v60, %v61_v42  ;;  %v205_v63 = vadd.f32 %v204_v61, %v61_v42  ;;  %v120_v0 = vpop.f32.mrf.mxu0  ;;  %v149_v1 = vpop.f32.mrf.mxu1 }
  0xa2   :  { %v121_v6 = vadd.f32 %v120_v0, %v66_v31  ;;  %v150_v7 = vadd.f32 %v149_v1, %v66_v31 }
  0xa3   :  { %v220_v4 = vmax.f32 %v176_v62, 0.0  ;;  %v221_v5 = vmax.f32 %v205_v63, 0.0 }
  0xa4   :  { %v222_v10 = vmax.f32 %v121_v6, 0.0  ;;  %v223_v11 = vmax.f32 %v150_v7, 0.0 }
  0xa5   :  { %v244_v8 = vadd.f32 %v221_v5, %v220_v4 }
  0xa6   :  { %v235_v14 = vadd.f32 %v223_v11, %v222_v10 }
  0xa7   :  { %245 = vadd.xlane.f32.xlu1 %v244_v8 }
  0xa8   :  { %227 = vadd.xlane.f32.xlu2 %v226_v9  ;;  %v178_v12 = vpop.f32.mrf.mxu2  ;;  %v207_v13 = vpop.f32.mrf.mxu3 }
  0xa9   :  { %v179_v15 = vadd.f32 %v178_v12, %v66_v31  ;;  %v208_v16 = vadd.f32 %v207_v13, %v66_v31 }
  0xab   :  { %v224_v18 = vmax.f32 %v179_v15, 0.0  ;;  %v225_v19 = vmax.f32 %v208_v16, 0.0 }
  0xad   :  { %v247_v22 = vadd.f32 %v225_v19, %v224_v18 }
  0xb0   :  { %236 = vadd.xlane.f32.xlu2 %v235_v14 }
  0xb4   :  { %270 = vperm.xlu0 %338, %v262_v17  }
  0xb8   :  { %248 = vadd.xlane.f32.xlu2 %v247_v22 }
  0xc0   :  { %239 = vadd.xlane.f32.xlu2 %v238_v25 }
  0xd8   :  { %265 = vperm.xlu2 %340, %v261_v28  }
 0x10b   :  { %v231_v26 = vpop.xlane.xlu2 %230 }
 0x113   :  { %v243_v27 = vpop.xlane.xlu2 %242  ;;  %v234_v32 = vpop.xlane.xlu0 %233 }
 0x114   :  { %v252_v37 = vsel %vm250_vm2, %v231_v26, %v243_v27 }
 0x115   :  { %v256_v39 = vmul.f32 0.00390625, %v252_v37 }
 0x11a   :  { %v246_v31 = vpop.xlane.xlu1 %245 }
 0x11b   :  { %v228_v29 = vpop.xlane.xlu2 %227  ;;  %v253_v34 = vsel %vm250_vm2, %v234_v32, %v246_v31 }
 0x11c   :  { %v257_v38 = vmul.f32 0.00390625, %v253_v34 }
 0x123   :  { %v237_v30 = vpop.xlane.xlu2 %236 }
 0x126   :  { %v271_v46 = vpop.permute.xlu0 %270 }
 0x12b   :  { %v249_v35 = vpop.xlane.xlu2 %248 }
 0x12c   :  { %v254_v33 = vsel %vm250_vm2, %v237_v30, %v249_v35 }
 0x12d   :  { %v258_v36 = vmul.f32 0.00390625, %v254_v33 }
 0x12f   :  { %292 = vmatpush.msrb.mxu0 %v258_v36  ;;  %333 = vmatpush.msrb.mxu1 %v258_v36 }
 0x131   :  { %293 = vmatpush.msrb.mxu0 %v257_v38  ;;  %334 = vmatpush.msrb.mxu1 %v257_v38 }
 0x133   :  { %294 = vmatpush.msrb.mxu0 %v256_v39  ;;  %335 = vmatpush.msrb.mxu1 %v256_v39  ;;  %v240_v40 = vpop.xlane.xlu2 %239 }
 0x134   :  { %v251_v41 = vsel %vm250_vm2, %v228_v29, %v240_v40 }
 0x135   :  { %v255_v42 = vmul.f32 0.00390625, %v251_v41 }
 0x137   :  { %295 = vmatpush.msrb.mxu0 %v255_v42  ;;  %336 = vmatpush.msrb.mxu1 %v255_v42 }
 0x138   :  { %332 = vmatmul.msk.f32.vlgmr.msrb.gmra.mxu1 %vm273_vm3, %v260_v43  ;;  %331 = vmatmul.msk.f32.vlgmr.msrb.gmra.mxu0 %vm273_vm3, %v259_v44 }
 0x13b   :  { %v266_v45 = vpop.permute.xlu2 %265 }
 0x1b5   :  { %v300_v47 = vpop.f32.mrf.mxu1  ;;  %v297_v48 = vpop.f32.mrf.mxu0 }
 0x1b6   :  { %v301_v49 = vadd.f32 %v300_v47, %v271_v46  ;;  %v298_v50 = vadd.f32 %v297_v48, %v266_v45 }
 0x1b8   :  { %306 = vst.msk [vmem:[%s495_s5 + $0x8] sm:$0x3] %vm305_vm4, %v301_v49 }
 0x1b9   :  { %304 = vst.msk [vmem:[%s495_s5] sm:$0xff] %vm303_vm5, %v298_v50 }

</bundles_post_ra>
